<compile_context>
chip_gen: v7x
topology: tpu7x:2x2x1
jax: 0.10.0
libtpu: 0.0.40
codegen_flags: <defaults>
</compile_context>

<pallas_src>
import numpy as np
import jax
import jax.numpy as jnp
from jax.experimental import pallas as pl
from jax.experimental.pallas import tpu as pltpu


# ---------------------------------------------------------------------------
# Path 1 (preferred): single-pass fused flatten (relayout happens in VMEM).
# ---------------------------------------------------------------------------
def _choose_c_chunk(B, C, H, W, itemsize):
    """Largest channel chunk that (a) divides C, (b) keeps per-step tiles a
    few MiB (fits every generation's scoped-VMEM default with double
    buffering), (c) keeps the output block lane-dense (multiple of 128)."""
    hw = H * W
    budget = 4 << 20                         # ~4 MiB per tile
    per_c = max(1, B * hw * itemsize)
    max_c = max(1, budget // per_c)
    cands = [d for d in range(1, C + 1)
             if C % d == 0 and d <= max_c and (d * hw) % 128 == 0]
    return max(cands) if cands else C        # full-array block always legal


def _flatten_fused_kernel(x_ref, o_ref):
    # x_ref: (B, Cc, H, W) VMEM tile; o_ref: (B, Cc*H*W) VMEM tile.
    # The NCHW -> (B, F) relayout is done here, in VMEM/vregs, so HBM sees
    # exactly one read of x and one write of the output.
    o_ref[...] = x_ref[...].reshape(o_ref.shape)


def _flatten_fused(x):
    B, C, H, W = x.shape
    F = C * H * W
    itemsize = jnp.dtype(x.dtype).itemsize
    cc = _choose_c_chunk(B, C, H, W, itemsize)
    fc = cc * H * W
    nbytes = B * F * itemsize

    return pl.pallas_call(
        _flatten_fused_kernel,
        out_shape=jax.ShapeDtypeStruct((B, F), x.dtype),
        grid_spec=pltpu.PrefetchScalarGridSpec(
            num_scalar_prefetch=0,
            grid=(C // cc,),
            # Input block: full H, W (satisfies the (8,128)/full-dim rule),
            # a contiguous chunk of channels per grid step.
            in_specs=[pl.BlockSpec((B, cc, H, W), lambda c: (0, c, 0, 0))],
            # Output block: full batch rows, lane-dense feature slice
            # (fc is a multiple of 128, or the full F).
            out_specs=pl.BlockSpec((B, fc), lambda c: (0, c)),
        ),
        # Independent output blocks per step -> "parallel": on v7x the two
        # TensorCores split the chunks; neutral on v5e/v6e (single TC).
        compiler_params=pltpu.CompilerParams(
            dimension_semantics=("parallel",)),
        cost_estimate=pl.CostEstimate(
            flops=0, transcendentals=0, bytes_accessed=2 * nbytes),
    )(x)


# ---------------------------------------------------------------------------
# Path 2 (fallback): zero-VMEM HBM->HBM copy of an already-flat (B, F) slab,
# split into several concurrently outstanding DMAs (v7x bandwidth hint).
# ---------------------------------------------------------------------------
def _flatten_copy(xf):
    B, F = xf.shape
    n = max(1, min(8, B))                       # row-contiguous chunks
    bounds = [(i * B) // n for i in range(n + 1)]
    nbytes = B * F * jnp.dtype(xf.dtype).itemsize

    def kernel(x_ref, o_ref, sems):
        cps = []
        for i in range(n):                      # static unroll: start all ...
            lo, hi = bounds[i], bounds[i + 1]
            cp = pltpu.make_async_copy(x_ref.at[lo:hi], o_ref.at[lo:hi],
                                       sems.at[i])
            cp.start()
            cps.append(cp)
        for cp in cps:                          # ... then wait all
            cp.wait()

    return pl.pallas_call(
        kernel,
        out_shape=jax.ShapeDtypeStruct((B, F), xf.dtype),
        in_specs=[pl.BlockSpec(memory_space=pl.ANY)],
        out_specs=pl.BlockSpec(memory_space=pl.ANY),
        scratch_shapes=[pltpu.SemaphoreType.DMA((n,))],
        cost_estimate=pl.CostEstimate(
            flops=0, transcendentals=0, bytes_accessed=2 * nbytes),
    )(xf)


# ---------------------------------------------------------------------------
# Public wrapper — semantics of torch `x.view(x.size(0), -1)`.
# ---------------------------------------------------------------------------
def flatten_forward(x, *, materialize=True):
    B = x.shape[0]
    F = int(np.prod(x.shape[1:]))
    if not materialize:
        # Review item (1)/(6): true view semantics, no kernel, no extra bytes.
        return jnp.reshape(x, (B, F))
    if x.ndim == 4:
        try:
            return _flatten_fused(x)
        except Exception:
            # Mosaic on this JAX version cannot lower the in-kernel relayout
            # for this shape — fall back to the proven copy kernel.
            pass
    # Generic / fallback path: XLA does the (possible) relayout, the kernel
    # materializes the flat slab with chunked HBM->HBM DMAs.
    return _flatten_copy(jnp.reshape(x, (B, F)))


if __name__ == "__main__":
    key = jax.random.PRNGKey(0)
    # Small NCHW input consistent with the module's expected usage.
    B, C, H, W = 2, 4, 16, 16
    x = jax.random.normal(key, (B, C, H, W), dtype=jnp.float32)

    out = flatten_forward(x)                 # kernel path
    out = jax.block_until_ready(out)

    # Reference: torch x.view(B, -1) == row-major reshape. Must be bit-exact.
    ref = np.asarray(x).reshape(B, -1)
    np.testing.assert_allclose(np.asarray(out), ref, rtol=0, atol=0)
    assert out.shape == (B, C * H * W)
    assert out.dtype == x.dtype

    # View (no-kernel) path must match as well.
    out_view = jax.block_until_ready(flatten_forward(x, materialize=False))
    np.testing.assert_allclose(np.asarray(out_view), ref, rtol=0, atol=0)

    print("KERNEL_OK")
</pallas_src>

<mosaic_0001>
module attributes {stable_mosaic.version = 11 : i64} {
  func.func @_flatten_fused_kernel(%arg0: i32, %arg1: memref<2x4x16x16xf32, #tpu.memory_space<vmem>>, %arg2: memref<2x1024xf32, #tpu.memory_space<vmem>>) attributes {dimension_semantics = [#tpu.dimension_semantics<parallel>], iteration_bounds = array<i64: 1>, scalar_prefetch = 0 : i64, scratch_operands = 0 : i64, tpu.core_type = #tpu.core_type<tc>, window_params = [{transform_indices = @transform_0, window_bounds = array<i64: 2, 4, 16, 16>}, {transform_indices = @transform_1, window_bounds = array<i64: 2, 1024>}]} {
    %c0 = arith.constant 0 : index
    %c0_0 = arith.constant 0 : index
    %c0_1 = arith.constant 0 : index
    %c0_2 = arith.constant 0 : index
    %0 = vector.load %arg1[%c0, %c0_0, %c0_1, %c0_2] : memref<2x4x16x16xf32, #tpu.memory_space<vmem>>, vector<2x4x16x16xf32>
    %1 = vector.shape_cast %0 : vector<2x4x16x16xf32> to vector<2x1024xf32>
    %c0_3 = arith.constant 0 : index
    %c0_4 = arith.constant 0 : index
    %2 = vector.load %arg2[%c0_3, %c0_4] : memref<2x1024xf32, #tpu.memory_space<vmem>>, vector<2x1024xf32>
    tpu.vector_store %arg2[%c0_3, %c0_4], %1 {strides = array<i32>} : memref<2x1024xf32, #tpu.memory_space<vmem>>, vector<2x1024xf32>,
    return
  }
  func.func @transform_0(%arg0: i32) -> (i32, i32, i32, i32) {
    %c0_i32 = arith.constant 0 : i32
    %c0_i32_0 = arith.constant 0 : i32
    %c0_i32_1 = arith.constant 0 : i32
    %c0_i32_2 = arith.constant 0 : i32
    return %c0_i32, %arg0, %c0_i32_0, %c0_i32_1 : i32, i32, i32, i32
  }
  func.func @transform_1(%arg0: i32) -> (i32, i32) {
    %c0_i32 = arith.constant 0 : i32
    %c0_i32_0 = arith.constant 0 : i32
    return %c0_i32, %arg0 : i32, i32
  }
}

module attributes {stable_mosaic.version = 11 : i64} {
  func.func @kernel(%arg0: memref<2x1024xf32, #tpu.memory_space<any>>, %arg1: memref<2x1024xf32, #tpu.memory_space<any>>, %arg2: memref<2x!tpu.dma_semaphore, #tpu.memory_space<semaphore_mem>>) attributes {dimension_semantics = [], scalar_prefetch = 0 : i64, scratch_operands = 1 : i64, tpu.core_type = #tpu.core_type<tc>} {
    %c0_i32 = arith.constant 0 : i32
    %c0_i32_0 = arith.constant 0 : i32
    %c0_i32_1 = arith.constant 0 : i32
    %0 = tpu.memref_slice %arg0[%c0_i32_0, %c0_i32_1] : memref<2x1024xf32, #tpu.memory_space<any>> -> memref<1x1024xf32, #tpu.memory_space<any>>
    %c0_i32_2 = arith.constant 0 : i32
    %c0_i32_3 = arith.constant 0 : i32
    %1 = tpu.memref_slice %arg1[%c0_i32_2, %c0_i32_3] : memref<2x1024xf32, #tpu.memory_space<any>> -> memref<1x1024xf32, #tpu.memory_space<any>>
    %2 = tpu.memref_slice %arg2[%c0_i32] : memref<2x!tpu.dma_semaphore, #tpu.memory_space<semaphore_mem>> -> memref<1x!tpu.dma_semaphore, #tpu.memory_space<semaphore_mem>>
    %3 = tpu.memref_squeeze %2 : memref<1x!tpu.dma_semaphore, #tpu.memory_space<semaphore_mem>> -> memref<!tpu.dma_semaphore, #tpu.memory_space<semaphore_mem>>
    tpu.enqueue_dma source(%0 : memref<1x1024xf32, #tpu.memory_space<any>>) target(%1 : memref<1x1024xf32, #tpu.memory_space<any>>) target_semaphore(%3 : memref<!tpu.dma_semaphore, #tpu.memory_space<semaphore_mem>>)
    %c1_i32 = arith.constant 1 : i32
    %c1_i32_4 = arith.constant 1 : i32
    %c0_i32_5 = arith.constant 0 : i32
    %4 = tpu.memref_slice %arg0[%c1_i32_4, %c0_i32_5] : memref<2x1024xf32, #tpu.memory_space<any>> -> memref<1x1024xf32, #tpu.memory_space<any>>
    %c1_i32_6 = arith.constant 1 : i32
    %c0_i32_7 = arith.constant 0 : i32
    %5 = tpu.memref_slice %arg1[%c1_i32_6, %c0_i32_7] : memref<2x1024xf32, #tpu.memory_space<any>> -> memref<1x1024xf32, #tpu.memory_space<any>>
    %6 = tpu.memref_slice %arg2[%c1_i32] : memref<2x!tpu.dma_semaphore, #tpu.memory_space<semaphore_mem>> -> memref<1x!tpu.dma_semaphore, #tpu.memory_space<semaphore_mem>>
    %7 = tpu.memref_squeeze %6 : memref<1x!tpu.dma_semaphore, #tpu.memory_space<semaphore_mem>> -> memref<!tpu.dma_semaphore, #tpu.memory_space<semaphore_mem>>
    tpu.enqueue_dma source(%4 : memref<1x1024xf32, #tpu.memory_space<any>>) target(%5 : memref<1x1024xf32, #tpu.memory_space<any>>) target_semaphore(%7 : memref<!tpu.dma_semaphore, #tpu.memory_space<semaphore_mem>>)
    %c0_i32_8 = arith.constant 0 : i32
    %c0_i32_9 = arith.constant 0 : i32
    %c0_i32_10 = arith.constant 0 : i32
    %8 = tpu.memref_slice %arg0[%c0_i32_9, %c0_i32_10] : memref<2x1024xf32, #tpu.memory_space<any>> -> memref<1x1024xf32, #tpu.memory_space<any>>
    %c0_i32_11 = arith.constant 0 : i32
    %c0_i32_12 = arith.constant 0 : i32
    %9 = tpu.memref_slice %arg1[%c0_i32_11, %c0_i32_12] : memref<2x1024xf32, #tpu.memory_space<any>> -> memref<1x1024xf32, #tpu.memory_space<any>>
    %10 = tpu.memref_slice %arg2[%c0_i32_8] : memref<2x!tpu.dma_semaphore, #tpu.memory_space<semaphore_mem>> -> memref<1x!tpu.dma_semaphore, #tpu.memory_space<semaphore_mem>>
    %11 = tpu.memref_squeeze %10 : memref<1x!tpu.dma_semaphore, #tpu.memory_space<semaphore_mem>> -> memref<!tpu.dma_semaphore, #tpu.memory_space<semaphore_mem>>
    tpu.wait_dma2 semaphore(%11 : memref<!tpu.dma_semaphore, #tpu.memory_space<semaphore_mem>>) src(%8 : memref<1x1024xf32, #tpu.memory_space<any>>) dst(%9 : memref<1x1024xf32, #tpu.memory_space<any>>)
    %c1_i32_13 = arith.constant 1 : i32
    %c1_i32_14 = arith.constant 1 : i32
    %c0_i32_15 = arith.constant 0 : i32
    %12 = tpu.memref_slice %arg0[%c1_i32_14, %c0_i32_15] : memref<2x1024xf32, #tpu.memory_space<any>> -> memref<1x1024xf32, #tpu.memory_space<any>>
    %c1_i32_16 = arith.constant 1 : i32
    %c0_i32_17 = arith.constant 0 : i32
    %13 = tpu.memref_slice %arg1[%c1_i32_16, %c0_i32_17] : memref<2x1024xf32, #tpu.memory_space<any>> -> memref<1x1024xf32, #tpu.memory_space<any>>
    %14 = tpu.memref_slice %arg2[%c1_i32_13] : memref<2x!tpu.dma_semaphore, #tpu.memory_space<semaphore_mem>> -> memref<1x!tpu.dma_semaphore, #tpu.memory_space<semaphore_mem>>
    %15 = tpu.memref_squeeze %14 : memref<1x!tpu.dma_semaphore, #tpu.memory_space<semaphore_mem>> -> memref<!tpu.dma_semaphore, #tpu.memory_space<semaphore_mem>>
    tpu.wait_dma2 semaphore(%15 : memref<!tpu.dma_semaphore, #tpu.memory_space<semaphore_mem>>) src(%12 : memref<1x1024xf32, #tpu.memory_space<any>>) dst(%13 : memref<1x1024xf32, #tpu.memory_space<any>>)
    return
  }
}

</mosaic_0001>

<bundles_post_ra>
// kernel: tpu_custom_call.1
= control target key start
LH: loop header
LB: loop body
LE: loop exit
PB: predicated region body
PF: predicated region fallthrough
CT: control target
= control target key end

     0   :  { %s78_s6 = smov 32   ;;  %s79_s7 = smov 1   ;;  %s107_s0 = inlined_call_operand.hbm [shape: f32[2,1024], index: 0, kind: input, shape index: {}]   ;;  %s108_s1 = inlined_call_operand.hbm [shape: f32[2,1024], index: 1, kind: output, shape index: {}]  }
   0x1   :  { %18 = sst [smem:[#allocation4]] %s78_s6  ;;  %s80_s8 = smov [#allocation2]  }
   0x2   :  { %20 = sst [smem:[#allocation4 + $0x1]] %s78_s6  ;;  %s81_s9 = smov [#allocation3]  }
   0x3   :  { %22 = sst [smem:[#allocation4 + $0x2]] %s79_s7  ;;  %s82_s10 = smov 0  }
   0x4   :  { %24 = dma.general %s107_s0, 128, %s108_s1, %s80_s8, %s81_s9, [#allocation4], %s82_s10, 0  }
   0x5   :  { %40 = sst [smem:[#allocation6]] %s78_s6  ;;  %s25_s17 = scalar_lea.hbm %s107_s0, 16 }
   0x6   :  { %42 = sst [smem:[#allocation6 + $0x1]] %s78_s6  ;;  %s26_s20 = scalar_lea.hbm %s108_s1, 16 }
   0x7   :  { %44 = sst [smem:[#allocation6 + $0x2]] %s79_s7  ;;  %s83_s21 = smov [#allocation2 + $0x1]  }
   0x8   :  { %s84_s22 = smov [#allocation5]  }
   0x9   :  { %46 = dma.general %s25_s17, 128, %s26_s20, %s83_s21, %s84_s22, [#allocation6], %s82_s10, 0  }
   0xa   :  { %74 = dma.done.wait [#allocation2], 128 }
   0xb   :  { %75 = vsyncadd [#allocation2], 4294967168 }
   0xc   :  { %76 = dma.done.wait [#allocation2 + $0x1], 128 }
   0xd   :  { %77 = vsyncadd [#allocation2 + $0x1], 4294967168 }
   0xe   :  { %52 = vsyncmov [#allocation2] }
  0x11   :  { %s53_s23 = vpop.sfrf %52 }
  0x12   :  { %p65_p0 = scmp.ne.s32.totalorder %s53_s23, 0 }
  0x14   :  { %57 = shalt.err (%p65_p0)  }
  0x15   :  { %59 = vsyncmov [#allocation2 + $0x1] }
  0x18   :  { %s60_s24 = vpop.sfrf %59 }
  0x19   :  { %p66_p1 = scmp.ne.s32.totalorder %s60_s24, 0 }
  0x1b   :  { %64 = shalt.err (%p66_p1)  }

</bundles_post_ra>
